<compile_context>
chip_gen: v6e
topology: v6e:2x2x1
jax: 0.10.0
libtpu: 0.0.40
codegen_flags: <defaults>
</compile_context>

<pallas_src>
import functools

import jax
import jax.numpy as jnp
from jax.experimental import pallas as pl
from jax.experimental.pallas import tpu as pltpu


def _round_up(x, m):
    return ((x + m - 1) // m) * m


def _vmem_budget():
    """(vmem_limit_bytes, resident_budget_bytes), generation-aware."""
    cap = 64 * 1024 * 1024  # conservative fallback = v7x physical VMEM
    try:
        cap = int(getattr(pltpu.get_tpu_info(), "vmem_capacity_bytes", cap))
    except Exception:
        pass
    limit = min((cap * 3) // 4, 96 * 1024 * 1024)  # 48 MiB v7x, 96 MiB v5e/v6e
    resident_budget = limit // 3                   # headroom for tiles/acc/out
    return limit, resident_budget


def sage_layer_kernel(a_ref, xw_ref, rhs_ref, invdeg_ref, o_ref, acc_ref, *,
                      tk, xw_resident, apply_relu, apply_log_softmax, c_out):
    k = pl.program_id(1)

    @pl.when(k == 0)
    def _():
        acc_ref[...] = jnp.zeros_like(acc_ref)

    # int8 edge counts -> bf16 on the VPU (cheap, hidden under DMA/MXU).
    a = a_ref[...].astype(jnp.bfloat16)
    if xw_resident:
        # XW lives whole in VMEM (DMA'd once); slice the k-th source slab.
        start = pl.multiple_of(k * tk, 128)
        xw = xw_ref[pl.ds(start, tk), :]
    else:
        xw = xw_ref[...]
    acc_ref[...] += jnp.dot(a, xw, preferred_element_type=jnp.float32)

    @pl.when(k == pl.num_programs(1) - 1)
    def _():
        # Exact mean normalization (inv_deg precomputed in f32) + lin_r + bias
        # (rhs_ref holds x_tgt @ W_r + b, precomputed once in the wrapper).
        out = acc_ref[...] * invdeg_ref[...] + rhs_ref[...]
        if apply_relu:
            out = jnp.maximum(out, 0.0)
        if apply_log_softmax:
            if c_out < out.shape[-1]:
                # Mask padded output columns so they don't pollute the softmax.
                col = jax.lax.broadcasted_iota(jnp.int32, out.shape, 1)
                out = jnp.where(col < c_out, out, -1e30)
            m = jnp.max(out, axis=-1, keepdims=True)
            z = out - m
            lse = jnp.log(jnp.sum(jnp.exp(z), axis=-1, keepdims=True))
            out = z - lse
        o_ref[...] = out.astype(o_ref.dtype)


def sage_layer(edge_index, x_src, x_tgt, w_l, b_l, w_r, *, relu, log_softmax,
               out_dtype=jnp.float32, tm_max=512, tk_max=2048):
    n_src, c_in = x_src.shape
    n_tgt = x_tgt.shape[0]
    c_out = w_l.shape[1]
    c_out_p = _round_up(c_out, 128)

    vmem_limit, resident_budget = _vmem_budget()

    # Tile sizes: tm multiple of 32 (int8 adjacency sublane packing), tk
    # multiple of 128 (lane axis of A / sublane axis of XW blocks).
    tm = min(tm_max, _round_up(n_tgt, 32))
    # v7x megacore: if the whole target dim fits a single (large) row tile,
    # split it in two so both TensorCores get work on the "parallel" axis.
    if n_tgt <= tm and tm >= 128:
        tm = _round_up((tm + 1) // 2, 32)
    tk = min(tk_max, _round_up(n_src, 128))
    n_tgt_p = _round_up(n_tgt, tm)
    n_src_p = _round_up(n_src, tk)

    src, tgt = edge_index[0], edge_index[1]

    # Dense edge-count adjacency (glue; scatter in plain JAX).  Stored int8 in
    # HBM -- A is the dominant bandwidth-bound stream -- cast to bf16 in-kernel.
    # (Edge multiplicities assumed < 128.)
    a = jnp.zeros((n_tgt_p, n_src_p), jnp.float32).at[tgt, src].add(1.0)
    a = a.astype(jnp.int8)

    # Exact mean normalization straight from the edge list (no dense reduction,
    # no approximate reciprocal).
    deg = jnp.zeros((n_tgt_p,), jnp.float32).at[tgt].add(1.0)
    inv_deg = (1.0 / jnp.maximum(deg, 1.0)).reshape(n_tgt_p, 1)

    # Hoisted one-shot transforms: XW = x_src @ W_l, rhs = x_tgt @ W_r + b.
    xw = jnp.dot(x_src.astype(jnp.float32), w_l,
                 preferred_element_type=jnp.float32)
    xw = jnp.pad(xw, ((0, n_src_p - n_src), (0, c_out_p - c_out)))
    xw = xw.astype(jnp.bfloat16)
    rhs = jnp.dot(x_tgt.astype(jnp.float32), w_r,
                  preferred_element_type=jnp.float32) + b_l.reshape(1, -1)
    rhs = jnp.pad(rhs, ((0, n_tgt_p - n_tgt), (0, c_out_p - c_out)))
    rhs = rhs.astype(jnp.float32)

    # Keep XW fully VMEM-resident (one DMA) when its double-buffered footprint
    # fits the generation-aware budget; otherwise stream (tk, C) tiles per k.
    xw_bytes = n_src_p * c_out_p * 2  # bf16
    xw_resident = 2 * xw_bytes <= resident_budget
    if xw_resident:
        xw_spec = pl.BlockSpec((n_src_p, c_out_p), lambda i, k: (0, 0))
    else:
        xw_spec = pl.BlockSpec((tk, c_out_p), lambda i, k: (k, 0))

    kernel = functools.partial(
        sage_layer_kernel, tk=tk, xw_resident=xw_resident,
        apply_relu=relu, apply_log_softmax=log_softmax, c_out=c_out)

    grid = (n_tgt_p // tm, n_src_p // tk)
    out_p = pl.pallas_call(
        kernel,
        out_shape=jax.ShapeDtypeStruct((n_tgt_p, c_out_p), out_dtype),
        grid_spec=pltpu.PrefetchScalarGridSpec(
            num_scalar_prefetch=0,
            grid=grid,
            in_specs=[
                pl.BlockSpec((tm, tk), lambda i, k: (i, k)),        # A (int8)
                xw_spec,                                            # XW (bf16)
                pl.BlockSpec((tm, c_out_p), lambda i, k: (i, 0)),   # lin_r + b
                pl.BlockSpec((tm, 1), lambda i, k: (i, 0)),         # inv_deg
            ],
            out_specs=pl.BlockSpec((tm, c_out_p), lambda i, k: (i, 0)),
            scratch_shapes=[pltpu.VMEM((tm, c_out_p), jnp.float32)],
        ),
        compiler_params=pltpu.CompilerParams(
            dimension_semantics=("parallel", "arbitrary"),
            vmem_limit_bytes=vmem_limit,
        ),
    )(a, xw, rhs, inv_deg)

    return out_p[:n_tgt, :c_out]


def sage_forward(x, adjs, params):
    """adjs: list of (edge_index, size=(n_src, n_tgt)), outermost layer first.

    NeighborSampler convention: target nodes are the first size[1] rows of x.
    """
    num_layers = len(params)
    for i, (edge_index, size) in enumerate(adjs):
        n_src, n_tgt = size
        assert x.shape[0] == n_src, "x rows must equal this hop's source count"
        w_l, b_l, w_r = params[i]
        last = (i == num_layers - 1)
        x = sage_layer(edge_index, x, x[:n_tgt], w_l, b_l, w_r,
                       relu=not last, log_softmax=last,
                       out_dtype=jnp.float32 if last else jnp.bfloat16)
        # F.dropout(p=0.5) is identity in eval mode (training=False).
    return x


def _ref_layer(edge_index, xs, xt, w_l, b_l, w_r, relu, log_softmax):
    """Pure-JAX f32 reference (PyG SAGEConv mean aggregation)."""
    s, t = edge_index[0], edge_index[1]
    nt = xt.shape[0]
    agg = jnp.zeros((nt, xs.shape[1]), jnp.float32).at[t].add(xs[s])
    deg = jnp.zeros((nt,), jnp.float32).at[t].add(1.0)
    agg = agg / jnp.maximum(deg, 1.0)[:, None]
    o = agg @ w_l + b_l + xt @ w_r
    if relu:
        o = jnp.maximum(o, 0.0)
    if log_softmax:
        o = jax.nn.log_softmax(o, axis=-1)
    return o


if __name__ == "__main__":
    key = jax.random.PRNGKey(0)

    in_channels, hidden_channels, out_channels = 16, 32, 8
    n_src0, n_tgt0, n_tgt1 = 24, 12, 4   # sampled-neighbor sizes per hop
    n_edges0, n_edges1 = 48, 16

    k = jax.random.split(key, 12)

    # Node features for all sampled nodes (hop-0 sources).
    x = jax.random.normal(k[0], (n_src0, in_channels), jnp.float32)

    # Bipartite edge indices: row 0 = source index into x, row 1 = target index.
    ei0 = jnp.stack([
        jax.random.randint(k[1], (n_edges0,), 0, n_src0),
        jax.random.randint(k[2], (n_edges0,), 0, n_tgt0),
    ]).astype(jnp.int32)
    ei1 = jnp.stack([
        jax.random.randint(k[3], (n_edges1,), 0, n_tgt0),
        jax.random.randint(k[4], (n_edges1,), 0, n_tgt1),
    ]).astype(jnp.int32)

    adjs = [(ei0, (n_src0, n_tgt0)), (ei1, (n_tgt0, n_tgt1))]

    # Deterministic parameter init (glorot-ish scaling).
    def glorot(kk, fan_in, fan_out):
        s = (2.0 / (fan_in + fan_out)) ** 0.5
        return s * jax.random.normal(kk, (fan_in, fan_out), jnp.float32)

    params = [
        (glorot(k[5], in_channels, hidden_channels),
         0.01 * jax.random.normal(k[6], (hidden_channels,), jnp.float32),
         glorot(k[7], in_channels, hidden_channels)),
        (glorot(k[8], hidden_channels, out_channels),
         0.01 * jax.random.normal(k[9], (out_channels,), jnp.float32),
         glorot(k[10], hidden_channels, out_channels)),
    ]

    out = sage_forward(x, adjs, params)
    out = jax.block_until_ready(out)

    assert out.shape == (n_tgt1, out_channels)
    # log_softmax rows should (log-)normalize to ~0.
    assert jnp.allclose(jnp.sum(jnp.exp(out), axis=-1), 1.0, atol=1e-4)

    # Pure-JAX f32 reference (loose tol: bf16 hidden activations + bf16 MXU).
    x_ref = x
    for i, (ei, size) in enumerate(adjs):
        last = (i == len(params) - 1)
        w_l, b_l, w_r = params[i]
        x_ref = _ref_layer(ei, x_ref, x_ref[:size[1]], w_l, b_l, w_r,
                           relu=not last, log_softmax=last)
    assert jnp.allclose(out, x_ref, atol=1e-1), float(
        jnp.max(jnp.abs(out - x_ref)))

    print("KERNEL_OK")
</pallas_src>

<mosaic_0001>
module attributes {stable_mosaic.version = 11 : i64} {
  func.func @sage_layer_kernel(%arg0: i32, %arg1: i32, %arg2: memref<32x128xi8, #tpu.memory_space<vmem>>, %arg3: memref<128x128xbf16, #tpu.memory_space<vmem>>, %arg4: memref<32x128xf32, #tpu.memory_space<vmem>>, %arg5: memref<32x1xf32, #tpu.memory_space<vmem>>, %arg6: memref<32x128xbf16, #tpu.memory_space<vmem>>, %arg7: memref<32x128xf32, #tpu.memory_space<vmem>>) attributes {dimension_semantics = [#tpu.dimension_semantics<parallel>, #tpu.dimension_semantics<arbitrary>], iteration_bounds = array<i64: 1, 1>, scalar_prefetch = 0 : i64, scratch_operands = 1 : i64, tpu.core_type = #tpu.core_type<tc>, window_params = [{transform_indices = @transform_0, window_bounds = array<i64: 32, 128>}, {pipeline_mode = #tpu.pipeline_mode<synchronous>, transform_indices = @transform_1, window_bounds = array<i64: 128, 128>}, {transform_indices = @transform_2, window_bounds = array<i64: 32, 128>}, {transform_indices = @transform_3, window_bounds = array<i64: 32, 1>}, {transform_indices = @transform_4, window_bounds = array<i64: 32, 128>}]} {
    %c0_i32 = arith.constant 0 : i32
    %0 = arith.cmpi eq, %arg1, %c0_i32 : i32
    %1 = arith.extui %0 : i1 to i32
    %c0_i32_0 = arith.constant 0 : i32
    %2 = arith.cmpi ne, %1, %c0_i32_0 : i32
    scf.if %2 {
      %cst_9 = arith.constant 0.000000e+00 : f32
      %16 = vector.broadcast %cst_9 : f32 to vector<32x128xf32>
      %c0_10 = arith.constant 0 : index
      %c0_11 = arith.constant 0 : index
      %17 = vector.load %arg7[%c0_10, %c0_11] : memref<32x128xf32, #tpu.memory_space<vmem>>, vector<32x128xf32>
      tpu.vector_store %arg7[%c0_10, %c0_11], %16 {strides = array<i32>} : memref<32x128xf32, #tpu.memory_space<vmem>>, vector<32x128xf32>,
    } else {
    }
    %c0 = arith.constant 0 : index
    %c0_1 = arith.constant 0 : index
    %3 = vector.load %arg2[%c0, %c0_1] : memref<32x128xi8, #tpu.memory_space<vmem>>, vector<32x128xi8>
    %4 = arith.sitofp %3 : vector<32x128xi8> to vector<32x128xbf16>
    %c128_i32 = arith.constant 128 : i32
    %5 = arith.muli %arg1, %c128_i32 : i32
    %6 = tpu.assume_multiple %5, 128 : i32
    %7 = arith.index_cast %6 : i32 to index
    %c0_2 = arith.constant 0 : index
    %8 = vector.load %arg3[%7, %c0_2] : memref<128x128xbf16, #tpu.memory_space<vmem>>, vector<128x128xbf16>
    %c0_3 = arith.constant 0 : index
    %c0_4 = arith.constant 0 : index
    %9 = vector.load %arg7[%c0_3, %c0_4] : memref<32x128xf32, #tpu.memory_space<vmem>>, vector<32x128xf32>
    %cst = arith.constant dense<0.000000e+00> : vector<32x128xf32>
    %10 = tpu.matmul %4, %8, %cst {dimension_numbers = #tpu.dot_dimension_numbers<[1], [0], [0], [1], [0, 0, 1, 1], [], []>} : vector<32x128xbf16>, vector<128x128xbf16>, vector<32x128xf32> -> vector<32x128xf32>
    %11 = arith.addf %9, %10 : vector<32x128xf32>
    %c0_5 = arith.constant 0 : index
    %c0_6 = arith.constant 0 : index
    %12 = vector.load %arg7[%c0_5, %c0_6] : memref<32x128xf32, #tpu.memory_space<vmem>>, vector<32x128xf32>
    tpu.vector_store %arg7[%c0_5, %c0_6], %11 {strides = array<i32>} : memref<32x128xf32, #tpu.memory_space<vmem>>, vector<32x128xf32>,
    %c0_i32_7 = arith.constant 0 : i32
    %13 = arith.cmpi eq, %arg1, %c0_i32_7 : i32
    %14 = arith.extui %13 : i1 to i32
    %c0_i32_8 = arith.constant 0 : i32
    %15 = arith.cmpi ne, %14, %c0_i32_8 : i32
    scf.if %15 {
      %c0_9 = arith.constant 0 : index
      %c0_10 = arith.constant 0 : index
      %16 = vector.load %arg7[%c0_9, %c0_10] : memref<32x128xf32, #tpu.memory_space<vmem>>, vector<32x128xf32>
      %c0_11 = arith.constant 0 : index
      %c0_12 = arith.constant 0 : index
      %17 = vector.load %arg5[%c0_11, %c0_12] : memref<32x1xf32, #tpu.memory_space<vmem>>, vector<32x1xf32>
      %18 = vector.broadcast %17 : vector<32x1xf32> to vector<32x128xf32>
      %19 = arith.mulf %16, %18 : vector<32x128xf32>
      %c0_13 = arith.constant 0 : index
      %c0_14 = arith.constant 0 : index
      %20 = vector.load %arg4[%c0_13, %c0_14] : memref<32x128xf32, #tpu.memory_space<vmem>>, vector<32x128xf32>
      %21 = arith.addf %19, %20 : vector<32x128xf32>
      %cst_15 = arith.constant 0.000000e+00 : f32
      %22 = vector.broadcast %cst_15 : f32 to vector<32x128xf32>
      %23 = arith.maximumf %21, %22 : vector<32x128xf32>
      %24 = arith.truncf %23 : vector<32x128xf32> to vector<32x128xbf16>
      %c0_16 = arith.constant 0 : index
      %c0_17 = arith.constant 0 : index
      %25 = vector.load %arg6[%c0_16, %c0_17] : memref<32x128xbf16, #tpu.memory_space<vmem>>, vector<32x128xbf16>
      tpu.vector_store %arg6[%c0_16, %c0_17], %24 {strides = array<i32>} : memref<32x128xbf16, #tpu.memory_space<vmem>>, vector<32x128xbf16>,
    } else {
    }
    return
  }
  func.func @transform_0(%arg0: i32, %arg1: i32) -> (i32, i32) {
    %c0_i32 = arith.constant 0 : i32
    return %arg0, %arg1 : i32, i32
  }
  func.func @transform_1(%arg0: i32, %arg1: i32) -> (i32, i32) {
    %c0_i32 = arith.constant 0 : i32
    %c0_i32_0 = arith.constant 0 : i32
    %c0_i32_1 = arith.constant 0 : i32
    return %c0_i32, %c0_i32_0 : i32, i32
  }
  func.func @transform_2(%arg0: i32, %arg1: i32) -> (i32, i32) {
    %c0_i32 = arith.constant 0 : i32
    %c0_i32_0 = arith.constant 0 : i32
    return %arg0, %c0_i32 : i32, i32
  }
  func.func @transform_3(%arg0: i32, %arg1: i32) -> (i32, i32) {
    %c0_i32 = arith.constant 0 : i32
    %c0_i32_0 = arith.constant 0 : i32
    return %arg0, %c0_i32 : i32, i32
  }
  func.func @transform_4(%arg0: i32, %arg1: i32) -> (i32, i32) {
    %c0_i32 = arith.constant 0 : i32
    %c0_i32_0 = arith.constant 0 : i32
    return %arg0, %c0_i32 : i32, i32
  }
}

</mosaic_0001>

<bundles_post_ra>
// kernel: tpu_custom_call.1
= control target key start
LH: loop header
LB: loop body
LE: loop exit
PB: predicated region body
PF: predicated region fallthrough
CT: control target
= control target key end

     0   :  { %9 = vsyncpa [#allocation4], 0  ;;  %s482_s0 = inlined_call_operand.hbm [shape: s8[32,128], index: 0, kind: input, shape index: {}]   ;;  %s483_s1 = inlined_call_operand.hbm [shape: bf16[128,128], index: 1, kind: input, shape index: {}]   ;;  %s484_s2 = inlined_call_operand.vmem [shape: f32[32,128], index: 2, kind: input, shape index: {}]   ;;  %s485_s3 = inlined_call_operand.vmem [shape: f32[32,1], index: 3, kind: input, shape index: {}]   ;;  %s486_s4 = inlined_call_operand.hbm [shape: bf16[32,128], index: 4, kind: output, shape index: {}]  }
   0x1   :  { %10 = vsyncpa [#allocation7], 0 }
   0x2   :  { %11 = vsyncpa [#allocation5], 0  ;;  %s412_s15 = smov [#allocation3]   ;;  %s413_s17 = smov [#allocation6]  }
   0x3   :  { %s18_s16 = sshll.u32 %s412_s15, 4  ;;  %s27_s18 = sshll.u32 %s413_s17, 4  ;;  %s19_s16 = int_to_ptr.vmem [resolvable:$true] %s18_s16  ;;  %s28_s18 = int_to_ptr.vmem [resolvable:$true] %s27_s18 }
   0x4   :  { %s354_s19 = scalar_lea.vmem %s19_s16, 128  ;;  %p359_p1 = scmp.lt.s32.totalorder %s19_s16, %s19_s16 }
   0x5   :  { %p355_p0 = scmp.ne.s32.totalorder %s19_s16, %s354_s19  ;;  %p360_p2 = scmp.lt.s32.totalorder %s354_s19, %s354_s19 }
   0x7   :  { %p361_p3 = por %p360_p2, %p359_p1 }
   0x9   :  { %p362_p4 = pnand %p361_p3, %p355_p0 }
   0xb   :  { %365 = shalt.err (!%p362_p4)
}
   0xc   :  { %21 = dma.hbm_to_vmem [thread:$0]  %s482_s0, 128, %s19_s16, [#allocation4]  }
   0xd   :  { %s374_s22 = scalar_lea.vmem %s28_s18, 1024  ;;  %p379_p6 = scmp.lt.s32.totalorder %s28_s18, %s28_s18 }
   0xe   :  { %p375_p5 = scmp.ne.s32.totalorder %s28_s18, %s374_s22  ;;  %p380_p7 = scmp.lt.s32.totalorder %s374_s22, %s374_s22 }
  0x10   :  { %p381_p8 = por %p380_p7, %p379_p6 }
  0x12   :  { %p382_p9 = pnand %p381_p8, %p375_p5 }
  0x14   :  { %385 = shalt.err (!%p382_p9)
}
  0x15   :  { %s414_s23 = smov 64   ;;  %s415_s24 = smov 4  }
  0x16   :  { %33 = dma.hbm_to_vmem [thread:$0]  %s483_s1, 1024, %s28_s18, [#allocation7], %s414_s23, %s414_s23, %s415_s24  }
  0x17   :  { %406 = dma.done.wait [#allocation4], 128  }
  0x18   :  { %407 = vsyncadd [#allocation4], 4294967168 }
  0x19   :  { %408 = dma.done.wait [#allocation7], 1024  }
  0x1a   :  { %409 = vsyncadd [#allocation7], 4294966272  ;;  %v416_v0 = vmov 0   ;;  %v338_v1 = vld [vmem:[#allocation6 + $0x38] sm:$0xff]   ;;  %v339_v2 = vld [vmem:[#allocation6 + $0x30] sm:$0xff]   ;;  %s417_s14 = smov [#allocation8]  }
  0x1b   :  { %337 = vset.pattern.permute.xlu1 %v416_v0  ;;  %336 = vset.pattern.permute.xlu0 %v416_v0  ;;  %v340_v3 = vld [vmem:[#allocation6 + $0x28] sm:$0xff]   ;;  %v341_v4 = vld [vmem:[#allocation6 + $0x20] sm:$0xff]   ;;  %v53_v5 = vld [vmem:[#allocation3] sm:$0xff]  ;;  %s258_s15 = sshll.u32 %s417_s14, 4  ;;  %s259_s15 = int_to_ptr.vmem [resolvable:$true] %s258_s15 }
  0x1c   :  { %310 = vmatprep.subr.bf16.mxu0 %v338_v1  ;;  %v195_v6 = vld [vmem:[%s485_s3 + $0x10] sm:$0xff]  ;;  %v193_v7 = vld [vmem:[%s485_s3] sm:$0xff]  ;;  %v54_v8 = vunpack.c.l.s8.bf16 %v53_v5  ;;  %v196_v9 = vld [vmem:[%s485_s3 + $0x18] sm:$0xff]  ;;  %v55_v15 = vunpack.c.h.s8.bf16 %v53_v5  ;;  %s386_s16 = scalar_lea.vmem %s259_s15, 256  ;;  %p391_p11 = scmp.lt.s32.totalorder %s259_s15, %s259_s15 }
  0x1d   :  { %311 = vmatpush3.bf16.msra.mxu0 %v338_v1  ;;  %209 = vperm.xlu1 %337, %v195_v6   ;;  %v194_v10 = vld [vmem:[%s485_s3 + $0x8] sm:$0xff]  ;;  %v342_v11 = vld [vmem:[#allocation6 + $0x18] sm:$0xff]   ;;  %v343_v12 = vld [vmem:[#allocation6 + $0x10] sm:$0xff]   ;;  %p387_p10 = scmp.ne.s32.totalorder %s259_s15, %s386_s16  ;;  %p392_p12 = scmp.lt.s32.totalorder %s386_s16, %s386_s16 }
  0x1e   :  { %312 = vmatprep.subr.bf16.mxu0 %v339_v2  ;;  %199 = vperm.xlu0 %336, %v193_v7   ;;  %v344_v13 = vld [vmem:[#allocation6 + $0x8] sm:$0xff]   ;;  %v345_v14 = vld [vmem:[#allocation6] sm:$0xff]   ;;  %v221_v24 = vld [vmem:[%s484_s2] sm:$0xff] }
  0x1f   :  { %326 = vmatprep.mubr.bf16.mxu0 %v54_v8  ;;  %v223_v20 = vld [vmem:[%s484_s2 + $0x10] sm:$0xff]  ;;  %v224_v26 = vld [vmem:[%s484_s2 + $0x18] sm:$0xff]  ;;  %v222_v31 = vld [vmem:[%s484_s2 + $0x8] sm:$0xff]  ;;  %p393_p13 = por %p392_p12, %p391_p11 }
  0x21   :  { %313 = vmatpush3.bf16.msra.mxu0 %v339_v2  ;;  %214 = vperm.xlu1 %337, %v196_v9   ;;  %p394_p0 = pnand %p393_p13, %p387_p10 }
  0x22   :  { %314 = vmatprep.subr.bf16.mxu0 %v340_v3  ;;  %204 = vperm.xlu0 %336, %v194_v10  }
  0x25   :  { %315 = vmatpush3.bf16.msra.mxu0 %v340_v3 }
  0x26   :  { %316 = vmatprep.subr.bf16.mxu0 %v341_v4 }
  0x29   :  { %317 = vmatpush3.bf16.msra.mxu0 %v341_v4 }
  0x2a   :  { %318 = vmatprep.subr.bf16.mxu0 %v342_v11 }
  0x2d   :  { %319 = vmatpush3.bf16.msra.mxu0 %v342_v11 }
  0x2e   :  { %320 = vmatprep.subr.bf16.mxu0 %v343_v12 }
  0x31   :  { %321 = vmatpush3.bf16.msra.mxu0 %v343_v12 }
  0x32   :  { %322 = vmatprep.subr.bf16.mxu0 %v344_v13 }
  0x35   :  { %323 = vmatpush3.bf16.msra.mxu0 %v344_v13 }
  0x36   :  { %324 = vmatprep.subr.bf16.mxu0 %v345_v14 }
  0x39   :  { %325 = vmatpush3.bf16.msra.mxu0 %v345_v14 }
  0x3c   :  { %327 = vmatmul.mubr.bf16.vlgmr.msra.gmra.mxu0 %v55_v15 }
  0x98   :  { %v210_v16 = vpop.permute.xlu1 %209 }
  0x99   :  { %v200_v17 = vpop.permute.xlu0 %199 }
  0x9c   :  { %v215_v23 = vpop.permute.xlu1 %214 }
  0x9d   :  { %v205_v29 = vpop.permute.xlu0 %204 }
  0xfc   :  { %v328_v18 = vpop.f32.mrf.mxu0 }
  0xfd   :  { %v219_v19 = vmul.f32 %v328_v18, %v210_v16 }
  0xfe   :  { %v163_v21 = vpop.f32.mrf.mxu0 }
  0xff   :  { %v217_v22 = vmul.f32 %v200_v17, %v163_v21  ;;  %v227_v27 = vadd.f32 %v223_v20, %v219_v19 }
 0x100   :  { %v329_v25 = vpop.f32.mrf.mxu0 }
 0x101   :  { %v220_v28 = vmul.f32 %v329_v25, %v215_v23  ;;  %v225_v32 = vadd.f32 %v221_v24, %v217_v22  ;;  %v231_v35 = vmax.f32 %v227_v27, 0.0 }
 0x102   :  { %v166_v30 = vpop.f32.mrf.mxu0 }
 0x103   :  { %v228_v33 = vadd.f32 %v224_v26, %v220_v28  ;;  %v218_v34 = vmul.f32 %v205_v29, %v166_v30  ;;  %v229_v38 = vmax.f32 %v225_v32, 0.0 }
 0x105   :  { %v232_v36 = vmax.f32 %v228_v33, 0.0  ;;  %v226_v37 = vadd.f32 %v222_v31, %v218_v34 }
 0x107   :  { %v297_v39 = vpack.c.bf16 %v232_v36, %v231_v35  ;;  %v230_v40 = vmax.f32 %v226_v37, 0.0 }
 0x109   :  { %299 = vst [vmem:[#allocation8 + $0x8] sm:$0xff] %v297_v39   ;;  %v292_v41 = vpack.c.bf16 %v230_v40, %v229_v38 }
 0x10b   :  { %293 = vst [vmem:[#allocation8] sm:$0xff] %v292_v41  }
 0x10c   :  { %397 = shalt.err (!%p394_p0)
}
 0x10d   :  { %264 = dma.vmem_to_hbm [thread:$0]  %s259_s15, 256, %s486_s4, [#allocation5], %s414_s23, %s414_s23, %s415_s24  }
 0x10e   :  { %410 = dma.done.wait [#allocation5], 256  }
 0x10f   :  { %411 = vsyncadd [#allocation5], 4294967040 }
 0x110   :  { %268 = vsyncpa [#allocation4], 1 }
 0x111   :  { %269 = vsyncpa [#allocation7], 1 }
 0x112   :  { %270 = vsyncpa [#allocation5], 1 }

</bundles_post_ra>
